<compile_context>
chip_gen: v7x
topology: tpu7x:2x2x1
jax: 0.10.0
libtpu: 0.0.40
codegen_flags: <defaults>
</compile_context>

<pallas_src>
import jax
import jax.numpy as jnp
from jax.experimental import pallas as pl
from jax.experimental.pallas import tpu as pltpu

HIDDEN = 128
LANE = 128


def policy_net_kernel(x_ref, w1_ref, b1_ref, w2_ref, b2_ref, w3_ref, b3_ref, o_ref):
    # fc1 + relu (bf16 operands on the MXU, f32 accumulate, bias/relu in f32)
    h1 = jnp.dot(x_ref[...], w1_ref[...], preferred_element_type=jnp.float32)
    h1 = jnp.maximum(h1 + b1_ref[...], 0.0)
    # fc2 + relu
    h2 = jnp.dot(h1.astype(w2_ref.dtype), w2_ref[...],
                 preferred_element_type=jnp.float32)
    h2 = jnp.maximum(h2 + b2_ref[...], 0.0)
    # fc3 (lane-padded columns carry zero weights and a -1e9 bias)
    logits = jnp.dot(h2.astype(w3_ref.dtype), w3_ref[...],
                     preferred_element_type=jnp.float32) + b3_ref[...]

    # torch: softmax(x - torch.max(x), dim=-1).clamp(min=1e-6)
    # The global-max shift cancels against the per-row shift (softmax is
    # shift-invariant), so only the row-wise max subtraction is needed.
    row_max = jnp.max(logits, axis=-1, keepdims=True)
    e = jnp.exp(logits - row_max)            # padded lanes -> exp(-1e9-..) == 0
    denom = jnp.sum(e, axis=-1, keepdims=True)
    probs = e / denom                        # exact divide: rows sum to 1 (f32)
    o_ref[...] = jnp.maximum(probs, 1e-6).astype(o_ref.dtype)


def _round_up(n, m):
    return ((n + m - 1) // m) * m


def prepare_params(w1, b1, w2, b2, w3, b3):
    """One-time weight prep, hoisted out of the per-call hot path."""
    hidden = w1.shape[1]
    out_dim = w3.shape[1]
    out_pad = max(LANE, _round_up(out_dim, LANE))  # exactly 128 lanes for small heads
    w1_bf = w1.astype(jnp.bfloat16)
    w2_bf = w2.astype(jnp.bfloat16)
    # Pad fc3: zero weight columns, very negative bias on padded lanes so they
    # contribute exactly 0 to the softmax sum.
    w3_bf = jnp.zeros((hidden, out_pad), jnp.bfloat16).at[:, :out_dim].set(
        w3.astype(jnp.bfloat16))
    b1_f = b1.reshape(1, -1).astype(jnp.float32)
    b2_f = b2.reshape(1, -1).astype(jnp.float32)
    b3_f = jnp.full((1, out_pad), -1e9, jnp.float32).at[:, :out_dim].set(
        b3.reshape(-1).astype(jnp.float32))
    return (w1_bf, b1_f, w2_bf, b2_f, w3_bf, b3_f), out_dim


def policy_network(x, prepared, out_dim, *, tile_b=512, out_dtype=jnp.float32):
    w1_bf, b1_f, w2_bf, b2_f, w3_bf, b3_f = prepared
    B, in_dim = x.shape
    hidden = w1_bf.shape[1]
    out_pad = w3_bf.shape[1]

    # bf16 MXU operands (accumulation stays f32 inside the kernel).
    x_bf = x.astype(jnp.bfloat16)

    # Batch tile: multiple of 16 (bf16 sublane packing), default up to 512.
    # For large batches, cap so the grid keeps >= 2 steps (v7x: both TCs get
    # work via the "parallel" axis); tiny batches use one padded tile.
    tb = min(tile_b, _round_up(B, 16))
    if B >= 32:
        tb = min(tb, _round_up(pl.cdiv(B, 2), 16))
    tb = max(tb, 16)
    num_tiles = pl.cdiv(B, tb)
    b_pad = num_tiles * tb
    if b_pad != B:
        x_bf = jnp.pad(x_bf, ((0, b_pad - B), (0, 0)))

    const0 = lambda i: (0, 0)  # weights/biases: same block every step -> VMEM-resident
    grid_spec = pltpu.PrefetchScalarGridSpec(
        num_scalar_prefetch=0,
        grid=(num_tiles,),
        in_specs=[
            pl.BlockSpec((tb, in_dim), lambda i: (i, 0)),    # x: pipelined over batch
            pl.BlockSpec((in_dim, hidden), const0),
            pl.BlockSpec((1, hidden), const0),
            pl.BlockSpec((hidden, hidden), const0),
            pl.BlockSpec((1, hidden), const0),
            pl.BlockSpec((hidden, out_pad), const0),
            pl.BlockSpec((1, out_pad), const0),
        ],
        out_specs=pl.BlockSpec((tb, out_pad), lambda i: (i, 0)),
    )

    out = pl.pallas_call(
        policy_net_kernel,
        out_shape=jax.ShapeDtypeStruct((b_pad, out_pad), out_dtype),
        grid_spec=grid_spec,
        compiler_params=pltpu.CompilerParams(
            dimension_semantics=("parallel",),   # v7x: shard batch tiles across 2 TCs
        ),
    )(x_bf, w1_bf, b1_f, w2_bf, b2_f, w3_bf, b3_f)

    return out[:B, :out_dim]


def init_params(key, input_dim, output_dim, hidden=HIDDEN):
    # Deterministic init mimicking nn.Linear's uniform(-1/sqrt(fan_in), 1/sqrt(fan_in)).
    ks = jax.random.split(key, 6)

    def linear(kw, kb, fan_in, fan_out):
        bound = 1.0 / jnp.sqrt(float(fan_in))
        # PyTorch stores weight as (out, in); we keep (in, out) so kernel does x @ W.
        w = jax.random.uniform(kw, (fan_in, fan_out), jnp.float32, -bound, bound)
        b = jax.random.uniform(kb, (1, fan_out), jnp.float32, -bound, bound)
        return w, b

    w1, b1 = linear(ks[0], ks[1], input_dim, hidden)
    w2, b2 = linear(ks[2], ks[3], hidden, hidden)
    w3, b3 = linear(ks[4], ks[5], hidden, output_dim)
    return w1, b1, w2, b2, w3, b3


def _reference(x, w1, b1, w2, b2, w3, b3):
    h1 = jnp.maximum(x @ w1 + b1, 0.0)
    h2 = jnp.maximum(h1 @ w2 + b2, 0.0)
    logits = h2 @ w3 + b3
    shifted = logits - jnp.max(logits)
    return jnp.maximum(jax.nn.softmax(shifted, axis=-1), 1e-6)


if __name__ == "__main__":
    key = jax.random.PRNGKey(0)
    k_x, k_p = jax.random.split(key)

    batch, input_dim, output_dim = 8, 16, 8
    x = jax.random.normal(k_x, (batch, input_dim), jnp.float32)
    params = init_params(k_p, input_dim, output_dim)
    prepared, out_dim = prepare_params(*params)   # one-time weight prep (hoisted)

    out = jax.block_until_ready(policy_network(x, prepared, out_dim))

    # sanity: shape, clamp floor, rows sum to ~1 (exact divide in kernel; the
    # 1e-6 clamp can only push sums marginally above 1, matching torch), and
    # agreement with the f32 reference (bf16 MXU operands -> small deviations).
    assert out.shape == (batch, output_dim)
    assert bool(jnp.all(out >= 1e-6))
    assert bool(jnp.allclose(jnp.sum(out, axis=-1), 1.0, atol=1e-3))
    ref = _reference(x, *params)
    assert bool(jnp.allclose(out, ref, atol=5e-2))

    print("KERNEL_OK")
</pallas_src>

<mosaic_0001>
module attributes {stable_mosaic.version = 11 : i64} {
  func.func @policy_net_kernel(%arg0: i32, %arg1: memref<16x16xbf16, #tpu.memory_space<vmem>>, %arg2: memref<16x128xbf16, #tpu.memory_space<vmem>>, %arg3: memref<1x128xf32, #tpu.memory_space<vmem>>, %arg4: memref<128x128xbf16, #tpu.memory_space<vmem>>, %arg5: memref<1x128xf32, #tpu.memory_space<vmem>>, %arg6: memref<128x128xbf16, #tpu.memory_space<vmem>>, %arg7: memref<1x128xf32, #tpu.memory_space<vmem>>, %arg8: memref<16x128xf32, #tpu.memory_space<vmem>>) attributes {dimension_semantics = [#tpu.dimension_semantics<parallel>], iteration_bounds = array<i64: 1>, scalar_prefetch = 0 : i64, scratch_operands = 0 : i64, tpu.core_type = #tpu.core_type<tc>, window_params = [{transform_indices = @transform_0, window_bounds = array<i64: 16, 16>}, {pipeline_mode = #tpu.pipeline_mode<synchronous>, transform_indices = @transform_1, window_bounds = array<i64: 16, 128>}, {pipeline_mode = #tpu.pipeline_mode<synchronous>, transform_indices = @transform_2, window_bounds = array<i64: 1, 128>}, {pipeline_mode = #tpu.pipeline_mode<synchronous>, transform_indices = @transform_3, window_bounds = array<i64: 128, 128>}, {pipeline_mode = #tpu.pipeline_mode<synchronous>, transform_indices = @transform_4, window_bounds = array<i64: 1, 128>}, {pipeline_mode = #tpu.pipeline_mode<synchronous>, transform_indices = @transform_5, window_bounds = array<i64: 128, 128>}, {pipeline_mode = #tpu.pipeline_mode<synchronous>, transform_indices = @transform_6, window_bounds = array<i64: 1, 128>}, {transform_indices = @transform_7, window_bounds = array<i64: 16, 128>}]} {
    %c0 = arith.constant 0 : index
    %c0_0 = arith.constant 0 : index
    %0 = vector.load %arg1[%c0, %c0_0] : memref<16x16xbf16, #tpu.memory_space<vmem>>, vector<16x16xbf16>
    %c0_1 = arith.constant 0 : index
    %c0_2 = arith.constant 0 : index
    %1 = vector.load %arg2[%c0_1, %c0_2] : memref<16x128xbf16, #tpu.memory_space<vmem>>, vector<16x128xbf16>
    %cst = arith.constant dense<0.000000e+00> : vector<16x128xf32>
    %2 = tpu.matmul %0, %1, %cst {dimension_numbers = #tpu.dot_dimension_numbers<[1], [0], [0], [1], [0, 0, 1, 1], [], []>} : vector<16x16xbf16>, vector<16x128xbf16>, vector<16x128xf32> -> vector<16x128xf32>
    %c0_3 = arith.constant 0 : index
    %c0_4 = arith.constant 0 : index
    %3 = vector.load %arg3[%c0_3, %c0_4] : memref<1x128xf32, #tpu.memory_space<vmem>>, vector<1x128xf32>
    %4 = vector.broadcast %3 : vector<1x128xf32> to vector<16x128xf32>
    %5 = arith.addf %2, %4 : vector<16x128xf32>
    %cst_5 = arith.constant 0.000000e+00 : f32
    %6 = vector.broadcast %cst_5 : f32 to vector<16x128xf32>
    %7 = arith.maximumf %5, %6 : vector<16x128xf32>
    %8 = arith.truncf %7 : vector<16x128xf32> to vector<16x128xbf16>
    %c0_6 = arith.constant 0 : index
    %c0_7 = arith.constant 0 : index
    %9 = vector.load %arg4[%c0_6, %c0_7] : memref<128x128xbf16, #tpu.memory_space<vmem>>, vector<128x128xbf16>
    %cst_8 = arith.constant dense<0.000000e+00> : vector<16x128xf32>
    %10 = tpu.matmul %8, %9, %cst_8 {dimension_numbers = #tpu.dot_dimension_numbers<[1], [0], [0], [1], [0, 0, 1, 1], [], []>} : vector<16x128xbf16>, vector<128x128xbf16>, vector<16x128xf32> -> vector<16x128xf32>
    %c0_9 = arith.constant 0 : index
    %c0_10 = arith.constant 0 : index
    %11 = vector.load %arg5[%c0_9, %c0_10] : memref<1x128xf32, #tpu.memory_space<vmem>>, vector<1x128xf32>
    %12 = vector.broadcast %11 : vector<1x128xf32> to vector<16x128xf32>
    %13 = arith.addf %10, %12 : vector<16x128xf32>
    %cst_11 = arith.constant 0.000000e+00 : f32
    %14 = vector.broadcast %cst_11 : f32 to vector<16x128xf32>
    %15 = arith.maximumf %13, %14 : vector<16x128xf32>
    %16 = arith.truncf %15 : vector<16x128xf32> to vector<16x128xbf16>
    %c0_12 = arith.constant 0 : index
    %c0_13 = arith.constant 0 : index
    %17 = vector.load %arg6[%c0_12, %c0_13] : memref<128x128xbf16, #tpu.memory_space<vmem>>, vector<128x128xbf16>
    %cst_14 = arith.constant dense<0.000000e+00> : vector<16x128xf32>
    %18 = tpu.matmul %16, %17, %cst_14 {dimension_numbers = #tpu.dot_dimension_numbers<[1], [0], [0], [1], [0, 0, 1, 1], [], []>} : vector<16x128xbf16>, vector<128x128xbf16>, vector<16x128xf32> -> vector<16x128xf32>
    %c0_15 = arith.constant 0 : index
    %c0_16 = arith.constant 0 : index
    %19 = vector.load %arg7[%c0_15, %c0_16] : memref<1x128xf32, #tpu.memory_space<vmem>>, vector<1x128xf32>
    %20 = vector.broadcast %19 : vector<1x128xf32> to vector<16x128xf32>
    %21 = arith.addf %18, %20 : vector<16x128xf32>
    %cst_17 = arith.constant dense<0xFF800000> : vector<16xf32>
    %22 = vector.multi_reduction <maximumf>, %21, %cst_17 [1] : vector<16x128xf32> to vector<16xf32>
    %23 = vector.shape_cast %22 : vector<16xf32> to vector<16x1xf32>
    %24 = vector.broadcast %23 : vector<16x1xf32> to vector<16x128xf32>
    %25 = arith.subf %21, %24 : vector<16x128xf32>
    %26 = math.exp %25 : vector<16x128xf32>
    %cst_18 = arith.constant dense<0.000000e+00> : vector<16xf32>
    %27 = vector.multi_reduction <add>, %26, %cst_18 [1] : vector<16x128xf32> to vector<16xf32>
    %28 = vector.shape_cast %27 : vector<16xf32> to vector<16x1xf32>
    %29 = vector.broadcast %28 : vector<16x1xf32> to vector<16x128xf32>
    %30 = arith.divf %26, %29 : vector<16x128xf32>
    %cst_19 = arith.constant 9.99999997E-7 : f32
    %31 = vector.broadcast %cst_19 : f32 to vector<16x128xf32>
    %32 = arith.maximumf %30, %31 : vector<16x128xf32>
    %c0_20 = arith.constant 0 : index
    %c0_21 = arith.constant 0 : index
    %33 = vector.load %arg8[%c0_20, %c0_21] : memref<16x128xf32, #tpu.memory_space<vmem>>, vector<16x128xf32>
    tpu.vector_store %arg8[%c0_20, %c0_21], %32 {strides = array<i32>} : memref<16x128xf32, #tpu.memory_space<vmem>>, vector<16x128xf32>,
    return
  }
  func.func @transform_0(%arg0: i32) -> (i32, i32) {
    %c0_i32 = arith.constant 0 : i32
    %c0_i32_0 = arith.constant 0 : i32
    return %arg0, %c0_i32 : i32, i32
  }
  func.func @transform_1(%arg0: i32) -> (i32, i32) {
    %c0_i32 = arith.constant 0 : i32
    %c0_i32_0 = arith.constant 0 : i32
    %c0_i32_1 = arith.constant 0 : i32
    return %c0_i32, %c0_i32_0 : i32, i32
  }
  func.func @transform_2(%arg0: i32) -> (i32, i32) {
    %c0_i32 = arith.constant 0 : i32
    %c0_i32_0 = arith.constant 0 : i32
    %c0_i32_1 = arith.constant 0 : i32
    return %c0_i32, %c0_i32_0 : i32, i32
  }
  func.func @transform_3(%arg0: i32) -> (i32, i32) {
    %c0_i32 = arith.constant 0 : i32
    %c0_i32_0 = arith.constant 0 : i32
    %c0_i32_1 = arith.constant 0 : i32
    return %c0_i32, %c0_i32_0 : i32, i32
  }
  func.func @transform_4(%arg0: i32) -> (i32, i32) {
    %c0_i32 = arith.constant 0 : i32
    %c0_i32_0 = arith.constant 0 : i32
    %c0_i32_1 = arith.constant 0 : i32
    return %c0_i32, %c0_i32_0 : i32, i32
  }
  func.func @transform_5(%arg0: i32) -> (i32, i32) {
    %c0_i32 = arith.constant 0 : i32
    %c0_i32_0 = arith.constant 0 : i32
    %c0_i32_1 = arith.constant 0 : i32
    return %c0_i32, %c0_i32_0 : i32, i32
  }
  func.func @transform_6(%arg0: i32) -> (i32, i32) {
    %c0_i32 = arith.constant 0 : i32
    %c0_i32_0 = arith.constant 0 : i32
    %c0_i32_1 = arith.constant 0 : i32
    return %c0_i32, %c0_i32_0 : i32, i32
  }
  func.func @transform_7(%arg0: i32) -> (i32, i32) {
    %c0_i32 = arith.constant 0 : i32
    %c0_i32_0 = arith.constant 0 : i32
    return %arg0, %c0_i32 : i32, i32
  }
}

</mosaic_0001>

<bundles_post_ra>
// kernel: tpu_custom_call.1
= control target key start
LH: loop header
LB: loop body
LE: loop exit
PB: predicated region body
PF: predicated region fallthrough
CT: control target
= control target key end

     0   :  { %12 = vsyncpa [#allocation3], 0  ;;  %s830_s0 = inlined_call_operand.hbm [shape: bf16[16,16], index: 0, kind: input, shape index: {}]   ;;  %s831_s1 = inlined_call_operand.hbm [shape: bf16[16,128], index: 1, kind: input, shape index: {}]   ;;  %s832_s2 = inlined_call_operand.vmem [shape: f32[1,128], index: 2, kind: input, shape index: {}]   ;;  %s833_s3 = inlined_call_operand.hbm [shape: bf16[128,128], index: 3, kind: input, shape index: {}]   ;;  %s834_s4 = inlined_call_operand.vmem [shape: f32[1,128], index: 4, kind: input, shape index: {}]   ;;  %s835_s5 = inlined_call_operand.hbm [shape: bf16[128,128], index: 5, kind: input, shape index: {}]   ;;  %s836_s6 = inlined_call_operand.vmem [shape: f32[1,128], index: 6, kind: input, shape index: {}]   ;;  %s837_s7 = inlined_call_operand.hbm [shape: f32[16,128], index: 7, kind: output, shape index: {}]  }
   0x1   :  { %13 = vsyncpa [#allocation6], 0 }
   0x2   :  { %14 = vsyncpa [#allocation9], 0 }
   0x3   :  { %15 = vsyncpa [#allocation4], 0  ;;  %s664_s24 = smov [#allocation5]   ;;  %s665_s26 = smov [#allocation2]  }
   0x4   :  { %s33_s25 = sshll.u32 %s664_s24, 4  ;;  %s21_s27 = sshll.u32 %s665_s26, 4  ;;  %s34_s25 = int_to_ptr.vmem [resolvable:$true] %s33_s25  ;;  %s715_s27 = int_to_ptr.vmem [resolvable:$true] %s21_s27 }
   0x5   :  { %s546_s30 = scalar_lea.hbm %s831_s1, 128 }
   0x6   :  { %p547_p0 = scmp.ne.s32.totalorder %s831_s1, %s546_s30  ;;  %p550_p1 = scmp.lt.u32.totalorder %s546_s30, %s831_s1 }
   0x8   :  { %p552_p2 = pnand %p550_p1, %p547_p0 }
   0xa   :  { %555 = shalt.err (!%p552_p2)
}
   0xb   :  { %s556_s12 = scalar_lea.vmem %s34_s25, 128  ;;  %p561_p4 = scmp.lt.s32.totalorder %s34_s25, %s34_s25 }
   0xc   :  { %p557_p3 = scmp.ne.s32.totalorder %s34_s25, %s556_s12  ;;  %p562_p5 = scmp.lt.s32.totalorder %s556_s12, %s556_s12 }
   0xe   :  { %p563_p6 = por %p562_p5, %p561_p4 }
  0x10   :  { %p564_p7 = pnand %p563_p6, %p557_p3 }
  0x12   :  { %567 = shalt.err (!%p564_p7)
}
  0x13   :  { %s666_s13 = smov 64   ;;  %s667_s14 = smov 4  }
  0x14   :  { %39 = dma.hbm_to_vmem [thread:$0]  %s831_s1, 128, %s34_s25, [#allocation6], %s666_s13, %s666_s13, %s667_s14  }
  0x15   :  { %s568_s19 = scalar_lea.hbm %s830_s0, 128 }
  0x16   :  { %p569_p8 = scmp.ne.s32.totalorder %s830_s0, %s568_s19  ;;  %p572_p9 = scmp.lt.u32.totalorder %s568_s19, %s830_s0 }
  0x18   :  { %p574_p10 = pnand %p572_p9, %p569_p8 }
  0x1a   :  { %577 = shalt.err (!%p574_p10)
}
  0x1b   :  { %s578_s24 = scalar_lea.vmem %s715_s27, 128  ;;  %p583_p12 = scmp.lt.s32.totalorder %s715_s27, %s715_s27 }
  0x1c   :  { %p579_p11 = scmp.ne.s32.totalorder %s715_s27, %s578_s24  ;;  %p584_p13 = scmp.lt.s32.totalorder %s578_s24, %s578_s24 }
  0x1e   :  { %p585_p0 = por %p584_p13, %p583_p12 }
  0x20   :  { %p586_p1 = pnand %p585_p0, %p579_p11 }
  0x22   :  { %589 = shalt.err (!%p586_p1)
}
  0x23   :  { %27 = dma.hbm_to_vmem [thread:$0]  %s830_s0, 128, %s715_s27, [#allocation3], %s666_s13, %s666_s13, %s667_s14  }
  0x24   :  { %s668_s26 = smov [#allocation7]   ;;  %s669_s29 = smov [#allocation8]  }
  0x25   :  { %s47_s28 = sshll.u32 %s668_s26, 4  ;;  %s61_s30 = sshll.u32 %s669_s29, 4  ;;  %s48_s28 = int_to_ptr.vmem [resolvable:$true] %s47_s28  ;;  %s752_s30 = int_to_ptr.vmem [resolvable:$true] %s61_s30 }
  0x26   :  { %s590_s10 = scalar_lea.hbm %s833_s3, 1024 }
  0x27   :  { %p591_p2 = scmp.ne.s32.totalorder %s833_s3, %s590_s10  ;;  %p594_p3 = scmp.lt.u32.totalorder %s590_s10, %s833_s3 }
  0x29   :  { %p596_p4 = pnand %p594_p3, %p591_p2 }
  0x2b   :  { %599 = shalt.err (!%p596_p4)
}
  0x2c   :  { %s600_s0 = scalar_lea.vmem %s48_s28, 1024  ;;  %p605_p6 = scmp.lt.s32.totalorder %s48_s28, %s48_s28 }
  0x2d   :  { %p601_p5 = scmp.ne.s32.totalorder %s48_s28, %s600_s0  ;;  %p606_p7 = scmp.lt.s32.totalorder %s600_s0, %s600_s0 }
  0x2f   :  { %p607_p8 = por %p606_p7, %p605_p6 }
  0x31   :  { %p608_p9 = pnand %p607_p8, %p601_p5 }
  0x33   :  { %611 = shalt.err (!%p608_p9)
}
  0x34   :  { %53 = dma.hbm_to_vmem [thread:$0]  %s833_s3, 1024, %s48_s28, [#allocation6], %s666_s13, %s666_s13, %s667_s14  }
  0x35   :  { %s612_s20 = scalar_lea.hbm %s835_s5, 1024 }
  0x36   :  { %p613_p10 = scmp.ne.s32.totalorder %s835_s5, %s612_s20  ;;  %p616_p11 = scmp.lt.u32.totalorder %s612_s20, %s835_s5 }
  0x38   :  { %p618_p12 = pnand %p616_p11, %p613_p10 }
  0x3a   :  { %621 = shalt.err (!%p618_p12)
}
  0x3b   :  { %s622_s1 = scalar_lea.vmem %s752_s30, 1024  ;;  %p627_p0 = scmp.lt.s32.totalorder %s752_s30, %s752_s30 }
  0x3c   :  { %p623_p13 = scmp.ne.s32.totalorder %s752_s30, %s622_s1  ;;  %p628_p1 = scmp.lt.s32.totalorder %s622_s1, %s622_s1 }
  0x3e   :  { %p629_p2 = por %p628_p1, %p627_p0 }
  0x40   :  { %p630_p3 = pnand %p629_p2, %p623_p13 }
  0x42   :  { %633 = shalt.err (!%p630_p3)
}
  0x43   :  { %67 = dma.hbm_to_vmem [thread:$0]  %s835_s5, 1024, %s752_s30, [#allocation9], %s666_s13, %s666_s13, %s667_s14  }
  0x44   :  { %656 = dma.done.wait [#allocation3], 128  }
  0x45   :  { %657 = vsyncadd [#allocation3], 4294967168 }
  0x46   :  { %658 = dma.done.wait [#allocation6], 1152  }
  0x47   :  { %659 = vsyncadd [#allocation6], 4294966144 }
  0x48   :  { %660 = dma.done.wait [#allocation9], 1024  }
  0x49   :  { %661 = vsyncadd [#allocation9], 4294966272  ;;  %v670_v0 = vmov 0.0   ;;  %vm671_vm0 = vmmov 0   ;;  %v520_v1 = vld [vmem:[#allocation5] sm:$0xff]   ;;  %v521_v2 = vld [vmem:[#allocation2] sm:$0xff]  }
  0x4a   :  { %463 = vmatprep.subr.bf16.mxu0 %v670_v0  ;;  %465 = vmatprep.mubr.msk.bf16.mxu0 %vm671_vm0, %v670_v0  ;;  %vm105_vm1 = vcmask 130048   ;;  %v522_v3 = vld [vmem:[#allocation7] sm:$0xff]   ;;  %v523_v4 = vld [vmem:[#allocation7 + $0x8] sm:$0xff]   ;;  %v524_v5 = vld [vmem:[#allocation7 + $0x10] sm:$0xff]  }
  0x4b   :  { %469 = vmatprep.subr.bf16.mxu1 %v670_v0  ;;  %485 = vmatprep.mubr.msk.bf16.mxu1 %vm671_vm0, %v670_v0  ;;  %v525_v6 = vld [vmem:[#allocation7 + $0x18] sm:$0xff]   ;;  %v526_v7 = vld [vmem:[#allocation7 + $0x20] sm:$0xff]   ;;  %v527_v8 = vld [vmem:[#allocation7 + $0x28] sm:$0xff]  }
  0x4c   :  { %464 = vmatpush3.bf16.msra.mxu0 %v520_v1  ;;  %470 = vmatpush3.bf16.msra.mxu1 %v522_v3  ;;  %v528_v9 = vld [vmem:[#allocation7 + $0x30] sm:$0xff]   ;;  %v529_v10 = vld [vmem:[#allocation7 + $0x38] sm:$0xff]   ;;  %v530_v11 = vld [vmem:[#allocation8] sm:$0xff]  }
  0x4d   :  { %489 = vmatprep.subr.bf16.mxu0 %v670_v0  ;;  %471 = vmatprep.subr.bf16.mxu1 %v670_v0  ;;  %v531_v12 = vld [vmem:[#allocation8 + $0x8] sm:$0xff]   ;;  %v532_v13 = vld [vmem:[#allocation8 + $0x10] sm:$0xff]   ;;  %v533_v14 = vld [vmem:[#allocation8 + $0x18] sm:$0xff]  }
  0x4e   :  { %v534_v15 = vld [vmem:[#allocation8 + $0x20] sm:$0xff]   ;;  %v535_v16 = vld [vmem:[#allocation8 + $0x28] sm:$0xff]   ;;  %v421_v17 = vld [vmem:[%s832_s2] ss:$0 sm:$0xff] }
  0x4f   :  { %466 = vmatmul.mubr.msk.bf16.vlgmr.msra.gmra.mrb[0].mxu0 %vm105_vm1, %v521_v2  ;;  %v536_v27 = vld [vmem:[#allocation8 + $0x30] sm:$0xff]   ;;  %v537_v28 = vld [vmem:[#allocation8 + $0x38] sm:$0xff]  }
  0x50   :  { %505 = vmatprep.mubr.msk.bf16.mxu0 %vm671_vm0, %v670_v0  ;;  %472 = vmatpush3.bf16.msra.mxu1 %v523_v4  ;;  %v425_v29 = vld [vmem:[%s834_s4] ss:$0 sm:$0xff]  ;;  %s672_s4 = smov [#allocation10]  }
  0x51   :  { %473 = vmatprep.subr.bf16.mxu1 %v670_v0  ;;  %490 = vmatpush3.bf16.msra.mxu0 %v530_v11  ;;  %v434_v39 = vld [vmem:[%s836_s6] ss:$0 sm:$0xff]  ;;  %s407_s6 = sshll.u32 %s672_s4, 4  ;;  %s408_s6 = int_to_ptr.vmem [resolvable:$true] %s407_s6 }
  0x52   :  { %491 = vmatprep.subr.bf16.mxu0 %v670_v0  ;;  %s634_s29 = scalar_lea.vmem %s408_s6, 256  ;;  %p639_p5 = scmp.lt.s32.totalorder %s408_s6, %s408_s6 }
  0x53   :  { %p635_p4 = scmp.ne.s32.totalorder %s408_s6, %s634_s29  ;;  %p640_p6 = scmp.lt.s32.totalorder %s634_s29, %s634_s29 }
  0x54   :  { %474 = vmatpush3.bf16.msra.mxu1 %v524_v5 }
  0x55   :  { %475 = vmatprep.subr.bf16.mxu1 %v670_v0  ;;  %492 = vmatpush3.bf16.msra.mxu0 %v531_v12  ;;  %p641_p7 = por %p640_p6, %p639_p5 }
  0x56   :  { %493 = vmatprep.subr.bf16.mxu0 %v670_v0 }
  0x57   :  { %p642_p8 = pnand %p641_p7, %p635_p4 }
  0x58   :  { %476 = vmatpush3.bf16.msra.mxu1 %v525_v6 }
  0x59   :  { %477 = vmatprep.subr.bf16.mxu1 %v670_v0  ;;  %494 = vmatpush3.bf16.msra.mxu0 %v532_v13 }
  0x5a   :  { %495 = vmatprep.subr.bf16.mxu0 %v670_v0 }
  0x5c   :  { %478 = vmatpush3.bf16.msra.mxu1 %v526_v7 }
  0x5d   :  { %479 = vmatprep.subr.bf16.mxu1 %v670_v0  ;;  %496 = vmatpush3.bf16.msra.mxu0 %v533_v14 }
  0x5e   :  { %497 = vmatprep.subr.bf16.mxu0 %v670_v0 }
  0x60   :  { %480 = vmatpush3.bf16.msra.mxu1 %v527_v8 }
  0x61   :  { %481 = vmatprep.subr.bf16.mxu1 %v670_v0  ;;  %498 = vmatpush3.bf16.msra.mxu0 %v534_v15 }
  0x62   :  { %499 = vmatprep.subr.bf16.mxu0 %v670_v0 }
  0x64   :  { %482 = vmatpush3.bf16.msra.mxu1 %v528_v9 }
  0x65   :  { %483 = vmatprep.subr.bf16.mxu1 %v670_v0  ;;  %500 = vmatpush3.bf16.msra.mxu0 %v535_v16 }
  0x66   :  { %501 = vmatprep.subr.bf16.mxu0 %v670_v0 }
  0x68   :  { %484 = vmatpush3.bf16.msra.mxu1 %v529_v10 }
  0x69   :  { %502 = vmatpush3.bf16.msra.mxu0 %v536_v27 }
  0x6a   :  { %503 = vmatprep.subr.bf16.mxu0 %v670_v0 }
  0x6d   :  { %504 = vmatpush3.bf16.msra.mxu0 %v537_v28 }
 0x122   :  { %v143_v18 = vpop.f32.mrb[0].mxu0 }
 0x123   :  { %v144_v19 = vadd.f32 %v421_v17, %v143_v18  ;;  %v467_v20 = vpop.f32.mrb[1].mxu0 }
 0x124   :  { %v146_v21 = vpop.f32.mrb[2].mxu0 }
 0x125   :  { %v147_v22 = vadd.f32 %v421_v17, %v146_v21  ;;  %v468_v23 = vpop.f32.mrb[3].mxu0  ;;  %v150_v24 = vmax.f32 %v144_v19, 0.0 }
 0x127   :  { %v151_v25 = vmax.f32 %v147_v22, 0.0 }
 0x129   :  { %v152_v26 = vpack.c.bf16 %v151_v25, %v150_v24 }
 0x12b   :  { %486 = vmatmul.mubr.bf16.vlgmr.msra.gmra.mrb[0].mxu1 %v152_v26 }
 0x1fe   :  { %v258_v30 = vpop.f32.mrb[0].mxu1 }
 0x1ff   :  { %v259_v31 = vadd.f32 %v425_v29, %v258_v30  ;;  %v487_v32 = vpop.f32.mrb[1].mxu1 }
 0x200   :  { %v261_v33 = vpop.f32.mrb[2].mxu1 }
 0x201   :  { %v262_v34 = vadd.f32 %v425_v29, %v261_v33  ;;  %v488_v35 = vpop.f32.mrb[3].mxu1  ;;  %v265_v36 = vmax.f32 %v259_v31, 0.0 }
 0x203   :  { %v266_v37 = vmax.f32 %v262_v34, 0.0 }
 0x205   :  { %v267_v38 = vpack.c.bf16 %v266_v37, %v265_v36 }
 0x207   :  { %506 = vmatmul.mubr.bf16.vlgmr.msra.gmra.mrb[4].mxu0 %v267_v38 }
 0x2da   :  { %v373_v40 = vpop.f32.mrb[4].mxu0 }
 0x2db   :  { %v374_v41 = vadd.f32 %v434_v39, %v373_v40  ;;  %v507_v42 = vpop.f32.mrb[5].mxu0 }
 0x2dc   :  { %v376_v43 = vpop.f32.mrb[6].mxu0 }
 0x2dd   :  { %380 = vmax.xlane.f32.xlu0 %v374_v41  ;;  %v508_v44 = vpop.f32.mrb[7].mxu0  ;;  %v377_v45 = vadd.f32 %v434_v39, %v376_v43 }
 0x2e1   :  { %382 = vmax.xlane.f32.xlu0 %v377_v45 }
 0x36a   :  { %v381_v46 = vpop.xlane.xlu0 %380 }
 0x36b   :  { %v384_v47 = vsub.f32 %v374_v41, %v381_v46 }
 0x36d   :  { %v386_v48 = vmul.f32 1.442695, %v384_v47 }
 0x36e   :  { %v383_v49 = vpop.xlane.xlu0 %382 }
 0x36f   :  { %538 = vpow2.f32 %v386_v48  ;;  %v385_v50 = vsub.f32 %v377_v45, %v383_v49 }
 0x371   :  { %v388_v51 = vmul.f32 1.442695, %v385_v50 }
 0x373   :  { %540 = vpow2.f32 %v388_v51 }
 0x379   :  { %v539_v52 = vpop.eup %538 }
 0x37a   :  { %390 = vadd.xlane.f32.xlu1 %v539_v52 }
 0x37d   :  { %v541_v53 = vpop.eup %540 }
 0x37e   :  { %392 = vadd.xlane.f32.xlu1 %v541_v53 }
 0x407   :  { %v391_v54 = vpop.xlane.xlu1 %390 }
 0x408   :  { %542 = vrcp.f32 %v391_v54 }
 0x40b   :  { %v393_v55 = vpop.xlane.xlu1 %392 }
 0x40c   :  { %544 = vrcp.f32 %v393_v55 }
 0x412   :  { %v543_v56 = vpop.eup %542 }
 0x413   :  { %v395_v57 = vmul.f32 %v543_v56, %v539_v52 }
 0x415   :  { %v398_v58 = vmax.f32 %v395_v57, 1e-06 }
 0x416   :  { %v545_v59 = vpop.eup %544 }
 0x417   :  { %v397_v60 = vmul.f32 %v545_v59, %v541_v53  ;;  %400 = vst [vmem:[#allocation10] sm:$0xff] %v398_v58 }
 0x419   :  { %v399_v61 = vmax.f32 %v397_v60, 1e-06 }
 0x41b   :  { %401 = vst [vmem:[#allocation10 + $0x8] sm:$0xff] %v399_v61 }
 0x41c   :  { %645 = shalt.err (!%p642_p8)
}
 0x41d   :  { %s646_s9 = scalar_lea.hbm %s837_s7, 256 }
 0x41e   :  { %p647_p9 = scmp.ne.s32.totalorder %s837_s7, %s646_s9  ;;  %p650_p10 = scmp.lt.u32.totalorder %s646_s9, %s837_s7 }
 0x420   :  { %p652_p11 = pnand %p650_p10, %p647_p9 }
 0x422   :  { %655 = shalt.err (!%p652_p11)
}
 0x423   :  { %s673_s16 = smov 128   ;;  %s674_s0 = smov 8  }
 0x424   :  { %413 = dma.vmem_to_hbm [thread:$0]  %s408_s6, 256, %s837_s7, [#allocation4], %s673_s16, %s673_s16, %s674_s0  }
 0x425   :  { %662 = dma.done.wait [#allocation4], 256  }
 0x426   :  { %663 = vsyncadd [#allocation4], 4294967040 }
 0x427   :  { %417 = vsyncpa [#allocation3], 1 }
 0x428   :  { %418 = vsyncpa [#allocation6], 1 }
 0x429   :  { %419 = vsyncpa [#allocation9], 1 }
 0x42a   :  { %420 = vsyncpa [#allocation4], 1 }

</bundles_post_ra>
